<compile_context>
chip_gen: v7x
topology: tpu7x:2x2x1
jax: 0.10.0
libtpu: 0.0.40
codegen_flags: <defaults>
</compile_context>

<pallas_src>
import functools

import jax
import jax.numpy as jnp
import numpy as np
from jax import lax
from jax.experimental import pallas as pl
from jax.experimental.pallas import tpu as pltpu


# ----------------------------------------------------------------------------
# Pallas kernel: per-step input projection + recurrence + chunked output linear
# ----------------------------------------------------------------------------
def gaussian_rnn_kernel(x_ref,      # (T_pad*BT, 1)  shifted inputs, time-major per tile
                        w_ih_ref,   # (1, H)   f32
                        bias_ref,   # (1, H)   f32   (b_ih + b_hh)
                        whhT_ref,   # (H, H)   bf16  W_hh^T
                        woutT_ref,  # (H, 2)   f32   W_out^T
                        bout_ref,   # (1, 2)   f32
                        out_ref,    # (T_pad*BT, 2)  [mean, log_var]
                        hs_ref,     # (Tc*BT, H) f32 scratch: hidden history (one chunk)
                        *, n_chunks, chunk_steps, batch_tile, unroll):
    hidden = whhT_ref.shape[0]

    def chunk_body(c, h):
        base = pl.multiple_of(c * (chunk_steps * batch_tile),
                              chunk_steps * batch_tile)

        def step(s, h):
            row = pl.multiple_of(s * batch_tile, batch_tile)
            xrow = pl.multiple_of(base + row, batch_tile)
            # In-kernel input projection: (BT,1)*(1,H)+(1,H) -> (BT,H) on VPU,
            # free under the MXU latency of the serial recurrence.
            z = (x_ref[pl.ds(xrow, batch_tile), :] * w_ih_ref[...]
                 + bias_ref[...])
            # Recurrence matmul: bf16 operands, f32 accumulation; tanh in f32.
            h_new = jnp.tanh(
                z + jnp.dot(h.astype(jnp.bfloat16), whhT_ref[...],
                            preferred_element_type=jnp.float32))
            # History write is off the h->h critical path.
            hs_ref[pl.ds(row, batch_tile), :] = h_new
            return h_new

        h = lax.fori_loop(0, chunk_steps, step, h, unroll=unroll)

        # One amortized output matmul + one bulk aligned store per time chunk.
        out_ref[pl.ds(base, chunk_steps * batch_tile), :] = (
            jnp.dot(hs_ref[...], woutT_ref[...],
                    preferred_element_type=jnp.float32) + bout_ref[...])
        return h

    h0 = jnp.zeros((batch_tile, hidden), jnp.float32)
    lax.fori_loop(0, n_chunks, chunk_body, h0)


# ----------------------------------------------------------------------------
# Wrapper: shift, layout plumbing, tiling decisions, pallas_call
# ----------------------------------------------------------------------------
def gaussian_rnn_forward(x, params, *, batch_tile_cap=128, chunk_cap=256):
    B, T = x.shape
    H = params["w_hh"].shape[0]

    # Batch tiling: pad to a multiple of 8 sublanes, tiles of <= batch_tile_cap.
    b8 = ((B + 7) // 8) * 8
    BT = min(b8, batch_tile_cap)
    n_btiles = pl.cdiv(b8, BT)
    B_pad = n_btiles * BT

    # Time chunking for the hidden-history scratch / output projection.
    Tc = min(T, chunk_cap)
    n_chunks = pl.cdiv(T, Tc)
    T_pad = n_chunks * Tc

    # Torch: x.roll(1, 1); x[:, 0] = 0  (fold the shift into layout prep).
    x_shift = jnp.pad(x[:, :-1].astype(jnp.float32), ((0, 0), (1, 0)))   # (B, T)
    x_pad = jnp.pad(x_shift, ((0, B_pad - B), (0, T_pad - T)))           # (B_pad, T_pad)
    # Per batch tile, time-major: row t*BT + b of tile i <-> (batch i*BT+b, time t).
    x_k = (x_pad.reshape(n_btiles, BT, T_pad)
                .transpose(0, 2, 1)
                .reshape(n_btiles * T_pad * BT, 1))

    w_ih_row = params["w_ih"].reshape(1, H).astype(jnp.float32)
    bias = (params["b_ih"] + params["b_hh"]).reshape(1, H).astype(jnp.float32)
    whhT = params["w_hh"].T.astype(jnp.bfloat16)       # MXU operand in bf16
    woutT = params["w_out"].T.astype(jnp.float32)      # (H, 2)
    bout = params["b_out"].reshape(1, 2).astype(jnp.float32)

    # VMEM budget: double-buffered in/out blocks + weights + chunk scratch + headroom,
    # clamped to stay within v7x's 64 MiB physical VMEM.
    blk_bytes = 2 * (T_pad * BT * 1 * 4) + 2 * (T_pad * BT * 2 * 4)
    fixed_bytes = H * H * 2 + 2 * H * 4 + H * 2 * 4 + 2 * 4
    scratch_bytes = Tc * BT * H * 4
    vmem_limit = int(min(48 << 20,
                         max(16 << 20,
                             2 * (blk_bytes + fixed_bytes + scratch_bytes)
                             + (8 << 20))))

    const = lambda shape: pl.BlockSpec(shape, lambda i: (0, 0))
    out = pl.pallas_call(
        functools.partial(gaussian_rnn_kernel,
                          n_chunks=n_chunks, chunk_steps=Tc,
                          batch_tile=BT, unroll=min(Tc, 8)),
        out_shape=jax.ShapeDtypeStruct((n_btiles * T_pad * BT, 2), jnp.float32),
        grid_spec=pltpu.PrefetchScalarGridSpec(
            num_scalar_prefetch=0,
            grid=(n_btiles,),
            in_specs=[
                pl.BlockSpec((T_pad * BT, 1), lambda i: (i, 0)),   # x, per batch tile
                const((1, H)),                                     # w_ih
                const((1, H)),                                     # b_ih + b_hh
                const((H, H)),                                     # W_hh^T (bf16)
                const((H, 2)),                                     # W_out^T
                const((1, 2)),                                     # b_out
            ],
            out_specs=pl.BlockSpec((T_pad * BT, 2), lambda i: (i, 0)),
            scratch_shapes=[pltpu.VMEM((Tc * BT, H), jnp.float32)]),
        compiler_params=pltpu.CompilerParams(
            dimension_semantics=("parallel",),
            vmem_limit_bytes=vmem_limit),
    )(x_k, w_ih_row, bias, whhT, woutT, bout)

    # Wrapper-side layout plumbing back to (B, T) mean / log_var.
    out = (out.reshape(n_btiles, T_pad, BT, 2)
              .transpose(0, 2, 1, 3)
              .reshape(B_pad, T_pad, 2)[:B, :T, :])
    return out[..., 0], out[..., 1]


# ----------------------------------------------------------------------------
# Pure-JAX reference (mirrors torch.nn.RNN + Linear semantics, all f32)
# ----------------------------------------------------------------------------
def gaussian_rnn_reference(x, params):
    B, T = x.shape
    H = params["w_hh"].shape[0]
    x_shifted = jnp.roll(x, 1, axis=1).at[:, 0].set(0.0)[..., None]   # (B,T,1)

    def step(h, xt):
        h_new = jnp.tanh(xt @ params["w_ih"].T + params["b_ih"]
                         + h @ params["w_hh"].T + params["b_hh"])
        return h_new, h_new

    h0 = jnp.zeros((B, H), jnp.float32)
    _, hs = lax.scan(step, h0, jnp.swapaxes(x_shifted, 0, 1))
    hs = jnp.swapaxes(hs, 0, 1)                                       # (B,T,H)
    out = hs @ params["w_out"].T + params["b_out"]                    # (B,T,2)
    return out[..., 0], out[..., 1]


def init_params(key, features, hidden_size):
    # Deterministic init matching the PyTorch parameter shapes
    # (nn.RNN / nn.Linear use U(-1/sqrt(H), 1/sqrt(H))).
    ks = jax.random.split(key, 6)
    bound = 1.0 / np.sqrt(hidden_size)
    u = lambda k, shape: jax.random.uniform(k, shape, jnp.float32, -bound, bound)
    return {
        "w_ih": u(ks[0], (hidden_size, features)),        # (H, 1)
        "w_hh": u(ks[1], (hidden_size, hidden_size)),     # (H, H)
        "b_ih": u(ks[2], (hidden_size,)),                 # (H,)
        "b_hh": u(ks[3], (hidden_size,)),                 # (H,)
        "w_out": u(ks[4], (2 * features, hidden_size)),   # (2, H)
        "b_out": u(ks[5], (2 * features,)),               # (2,)
    }


if __name__ == "__main__":
    FEATURES = 1        # implied by the forward (input feature dim is 1)
    HIDDEN = 32
    BATCH = 2
    SEQ = 8

    key = jax.random.PRNGKey(0)
    k_x, k_p = jax.random.split(key)
    x = jax.random.normal(k_x, (BATCH, SEQ), jnp.float32)
    params = init_params(k_p, FEATURES, HIDDEN)

    mean, log_var = jax.jit(gaussian_rnn_forward)(x, params)
    jax.block_until_ready((mean, log_var))

    ref_mean, ref_log_var = gaussian_rnn_reference(x, params)
    assert mean.shape == (BATCH, SEQ) and log_var.shape == (BATCH, SEQ)
    # Tolerance relaxed from 1e-5 because the recurrence matmul now uses bf16
    # operands (f32 accumulation); expected error is ~1e-3, margin applied.
    np.testing.assert_allclose(np.asarray(mean), np.asarray(ref_mean),
                               rtol=2e-2, atol=2e-2)
    np.testing.assert_allclose(np.asarray(log_var), np.asarray(ref_log_var),
                               rtol=2e-2, atol=2e-2)
    print("KERNEL_OK")
</pallas_src>

<mosaic_0001>
module attributes {stable_mosaic.version = 11 : i64} {
  func.func @gaussian_rnn_kernel(%arg0: i32, %arg1: memref<64x1xf32, #tpu.memory_space<vmem>>, %arg2: memref<1x32xf32, #tpu.memory_space<vmem>>, %arg3: memref<1x32xf32, #tpu.memory_space<vmem>>, %arg4: memref<32x32xbf16, #tpu.memory_space<vmem>>, %arg5: memref<32x2xf32, #tpu.memory_space<vmem>>, %arg6: memref<1x2xf32, #tpu.memory_space<vmem>>, %arg7: memref<64x2xf32, #tpu.memory_space<vmem>>, %arg8: memref<64x32xf32, #tpu.memory_space<vmem>>) attributes {dimension_semantics = [#tpu.dimension_semantics<parallel>], iteration_bounds = array<i64: 1>, scalar_prefetch = 0 : i64, scratch_operands = 1 : i64, tpu.core_type = #tpu.core_type<tc>, window_params = [{transform_indices = @transform_0, window_bounds = array<i64: 64, 1>}, {pipeline_mode = #tpu.pipeline_mode<synchronous>, transform_indices = @transform_1, window_bounds = array<i64: 1, 32>}, {pipeline_mode = #tpu.pipeline_mode<synchronous>, transform_indices = @transform_2, window_bounds = array<i64: 1, 32>}, {pipeline_mode = #tpu.pipeline_mode<synchronous>, transform_indices = @transform_3, window_bounds = array<i64: 32, 32>}, {pipeline_mode = #tpu.pipeline_mode<synchronous>, transform_indices = @transform_4, window_bounds = array<i64: 32, 2>}, {pipeline_mode = #tpu.pipeline_mode<synchronous>, transform_indices = @transform_5, window_bounds = array<i64: 1, 2>}, {transform_indices = @transform_6, window_bounds = array<i64: 64, 2>}]} {
    %cst = arith.constant 0.000000e+00 : f32
    %0 = vector.broadcast %cst : f32 to vector<8x32xf32>
    %c0_i32 = arith.constant 0 : i32
    %c64_i32 = arith.constant 64 : i32
    %1 = arith.muli %c0_i32, %c64_i32 : i32
    %2 = tpu.assume_multiple %1, 64 : i32
    %c0_i32_0 = arith.constant 0 : i32
    %c8_i32 = arith.constant 8 : i32
    %3 = arith.muli %c0_i32_0, %c8_i32 : i32
    %4 = tpu.assume_multiple %3, 8 : i32
    %5 = arith.addi %2, %4 : i32
    %6 = tpu.assume_multiple %5, 8 : i32
    %7 = arith.index_cast %6 : i32 to index
    %c0 = arith.constant 0 : index
    %8 = vector.load %arg1[%7, %c0] : memref<64x1xf32, #tpu.memory_space<vmem>>, vector<8x1xf32>
    %c0_1 = arith.constant 0 : index
    %c0_2 = arith.constant 0 : index
    %9 = vector.load %arg2[%c0_1, %c0_2] : memref<1x32xf32, #tpu.memory_space<vmem>>, vector<1x32xf32>
    %10 = vector.broadcast %8 : vector<8x1xf32> to vector<8x32xf32>
    %11 = vector.broadcast %9 : vector<1x32xf32> to vector<8x32xf32>
    %12 = arith.mulf %10, %11 : vector<8x32xf32>
    %c0_3 = arith.constant 0 : index
    %c0_4 = arith.constant 0 : index
    %13 = vector.load %arg3[%c0_3, %c0_4] : memref<1x32xf32, #tpu.memory_space<vmem>>, vector<1x32xf32>
    %14 = vector.broadcast %13 : vector<1x32xf32> to vector<8x32xf32>
    %15 = arith.addf %12, %14 : vector<8x32xf32>
    %16 = arith.truncf %0 : vector<8x32xf32> to vector<8x32xbf16>
    %c0_5 = arith.constant 0 : index
    %c0_6 = arith.constant 0 : index
    %17 = vector.load %arg4[%c0_5, %c0_6] : memref<32x32xbf16, #tpu.memory_space<vmem>>, vector<32x32xbf16>
    %cst_7 = arith.constant dense<0.000000e+00> : vector<8x32xf32>
    %18 = tpu.matmul %16, %17, %cst_7 {dimension_numbers = #tpu.dot_dimension_numbers<[1], [0], [0], [1], [0, 0, 1, 1], [], []>} : vector<8x32xbf16>, vector<32x32xbf16>, vector<8x32xf32> -> vector<8x32xf32>
    %19 = arith.addf %15, %18 : vector<8x32xf32>
    %20 = math.tanh %19 : vector<8x32xf32>
    %21 = arith.index_cast %4 : i32 to index
    %c0_8 = arith.constant 0 : index
    %22 = vector.load %arg8[%21, %c0_8] : memref<64x32xf32, #tpu.memory_space<vmem>>, vector<8x32xf32>
    tpu.vector_store %arg8[%21, %c0_8], %20 {strides = array<i32>} : memref<64x32xf32, #tpu.memory_space<vmem>>, vector<8x32xf32>,
    %c1_i32 = arith.constant 1 : i32
    %c8_i32_9 = arith.constant 8 : i32
    %23 = arith.muli %c1_i32, %c8_i32_9 : i32
    %24 = tpu.assume_multiple %23, 8 : i32
    %25 = arith.addi %2, %24 : i32
    %26 = tpu.assume_multiple %25, 8 : i32
    %27 = arith.index_cast %26 : i32 to index
    %c0_10 = arith.constant 0 : index
    %28 = vector.load %arg1[%27, %c0_10] : memref<64x1xf32, #tpu.memory_space<vmem>>, vector<8x1xf32>
    %c0_11 = arith.constant 0 : index
    %c0_12 = arith.constant 0 : index
    %29 = vector.load %arg2[%c0_11, %c0_12] : memref<1x32xf32, #tpu.memory_space<vmem>>, vector<1x32xf32>
    %30 = vector.broadcast %28 : vector<8x1xf32> to vector<8x32xf32>
    %31 = vector.broadcast %29 : vector<1x32xf32> to vector<8x32xf32>
    %32 = arith.mulf %30, %31 : vector<8x32xf32>
    %c0_13 = arith.constant 0 : index
    %c0_14 = arith.constant 0 : index
    %33 = vector.load %arg3[%c0_13, %c0_14] : memref<1x32xf32, #tpu.memory_space<vmem>>, vector<1x32xf32>
    %34 = vector.broadcast %33 : vector<1x32xf32> to vector<8x32xf32>
    %35 = arith.addf %32, %34 : vector<8x32xf32>
    %36 = arith.truncf %20 : vector<8x32xf32> to vector<8x32xbf16>
    %c0_15 = arith.constant 0 : index
    %c0_16 = arith.constant 0 : index
    %37 = vector.load %arg4[%c0_15, %c0_16] : memref<32x32xbf16, #tpu.memory_space<vmem>>, vector<32x32xbf16>
    %cst_17 = arith.constant dense<0.000000e+00> : vector<8x32xf32>
    %38 = tpu.matmul %36, %37, %cst_17 {dimension_numbers = #tpu.dot_dimension_numbers<[1], [0], [0], [1], [0, 0, 1, 1], [], []>} : vector<8x32xbf16>, vector<32x32xbf16>, vector<8x32xf32> -> vector<8x32xf32>
    %39 = arith.addf %35, %38 : vector<8x32xf32>
    %40 = math.tanh %39 : vector<8x32xf32>
    %41 = arith.index_cast %24 : i32 to index
    %c0_18 = arith.constant 0 : index
    %42 = vector.load %arg8[%41, %c0_18] : memref<64x32xf32, #tpu.memory_space<vmem>>, vector<8x32xf32>
    tpu.vector_store %arg8[%41, %c0_18], %40 {strides = array<i32>} : memref<64x32xf32, #tpu.memory_space<vmem>>, vector<8x32xf32>,
    %c2_i32 = arith.constant 2 : i32
    %c8_i32_19 = arith.constant 8 : i32
    %43 = arith.muli %c2_i32, %c8_i32_19 : i32
    %44 = tpu.assume_multiple %43, 8 : i32
    %45 = arith.addi %2, %44 : i32
    %46 = tpu.assume_multiple %45, 8 : i32
    %47 = arith.index_cast %46 : i32 to index
    %c0_20 = arith.constant 0 : index
    %48 = vector.load %arg1[%47, %c0_20] : memref<64x1xf32, #tpu.memory_space<vmem>>, vector<8x1xf32>
    %c0_21 = arith.constant 0 : index
    %c0_22 = arith.constant 0 : index
    %49 = vector.load %arg2[%c0_21, %c0_22] : memref<1x32xf32, #tpu.memory_space<vmem>>, vector<1x32xf32>
    %50 = vector.broadcast %48 : vector<8x1xf32> to vector<8x32xf32>
    %51 = vector.broadcast %49 : vector<1x32xf32> to vector<8x32xf32>
    %52 = arith.mulf %50, %51 : vector<8x32xf32>
    %c0_23 = arith.constant 0 : index
    %c0_24 = arith.constant 0 : index
    %53 = vector.load %arg3[%c0_23, %c0_24] : memref<1x32xf32, #tpu.memory_space<vmem>>, vector<1x32xf32>
    %54 = vector.broadcast %53 : vector<1x32xf32> to vector<8x32xf32>
    %55 = arith.addf %52, %54 : vector<8x32xf32>
    %56 = arith.truncf %40 : vector<8x32xf32> to vector<8x32xbf16>
    %c0_25 = arith.constant 0 : index
    %c0_26 = arith.constant 0 : index
    %57 = vector.load %arg4[%c0_25, %c0_26] : memref<32x32xbf16, #tpu.memory_space<vmem>>, vector<32x32xbf16>
    %cst_27 = arith.constant dense<0.000000e+00> : vector<8x32xf32>
    %58 = tpu.matmul %56, %57, %cst_27 {dimension_numbers = #tpu.dot_dimension_numbers<[1], [0], [0], [1], [0, 0, 1, 1], [], []>} : vector<8x32xbf16>, vector<32x32xbf16>, vector<8x32xf32> -> vector<8x32xf32>
    %59 = arith.addf %55, %58 : vector<8x32xf32>
    %60 = math.tanh %59 : vector<8x32xf32>
    %61 = arith.index_cast %44 : i32 to index
    %c0_28 = arith.constant 0 : index
    %62 = vector.load %arg8[%61, %c0_28] : memref<64x32xf32, #tpu.memory_space<vmem>>, vector<8x32xf32>
    tpu.vector_store %arg8[%61, %c0_28], %60 {strides = array<i32>} : memref<64x32xf32, #tpu.memory_space<vmem>>, vector<8x32xf32>,
    %c3_i32 = arith.constant 3 : i32
    %c8_i32_29 = arith.constant 8 : i32
    %63 = arith.muli %c3_i32, %c8_i32_29 : i32
    %64 = tpu.assume_multiple %63, 8 : i32
    %65 = arith.addi %2, %64 : i32
    %66 = tpu.assume_multiple %65, 8 : i32
    %67 = arith.index_cast %66 : i32 to index
    %c0_30 = arith.constant 0 : index
    %68 = vector.load %arg1[%67, %c0_30] : memref<64x1xf32, #tpu.memory_space<vmem>>, vector<8x1xf32>
    %c0_31 = arith.constant 0 : index
    %c0_32 = arith.constant 0 : index
    %69 = vector.load %arg2[%c0_31, %c0_32] : memref<1x32xf32, #tpu.memory_space<vmem>>, vector<1x32xf32>
    %70 = vector.broadcast %68 : vector<8x1xf32> to vector<8x32xf32>
    %71 = vector.broadcast %69 : vector<1x32xf32> to vector<8x32xf32>
    %72 = arith.mulf %70, %71 : vector<8x32xf32>
    %c0_33 = arith.constant 0 : index
    %c0_34 = arith.constant 0 : index
    %73 = vector.load %arg3[%c0_33, %c0_34] : memref<1x32xf32, #tpu.memory_space<vmem>>, vector<1x32xf32>
    %74 = vector.broadcast %73 : vector<1x32xf32> to vector<8x32xf32>
    %75 = arith.addf %72, %74 : vector<8x32xf32>
    %76 = arith.truncf %60 : vector<8x32xf32> to vector<8x32xbf16>
    %c0_35 = arith.constant 0 : index
    %c0_36 = arith.constant 0 : index
    %77 = vector.load %arg4[%c0_35, %c0_36] : memref<32x32xbf16, #tpu.memory_space<vmem>>, vector<32x32xbf16>
    %cst_37 = arith.constant dense<0.000000e+00> : vector<8x32xf32>
    %78 = tpu.matmul %76, %77, %cst_37 {dimension_numbers = #tpu.dot_dimension_numbers<[1], [0], [0], [1], [0, 0, 1, 1], [], []>} : vector<8x32xbf16>, vector<32x32xbf16>, vector<8x32xf32> -> vector<8x32xf32>
    %79 = arith.addf %75, %78 : vector<8x32xf32>
    %80 = math.tanh %79 : vector<8x32xf32>
    %81 = arith.index_cast %64 : i32 to index
    %c0_38 = arith.constant 0 : index
    %82 = vector.load %arg8[%81, %c0_38] : memref<64x32xf32, #tpu.memory_space<vmem>>, vector<8x32xf32>
    tpu.vector_store %arg8[%81, %c0_38], %80 {strides = array<i32>} : memref<64x32xf32, #tpu.memory_space<vmem>>, vector<8x32xf32>,
    %c4_i32 = arith.constant 4 : i32
    %c8_i32_39 = arith.constant 8 : i32
    %83 = arith.muli %c4_i32, %c8_i32_39 : i32
    %84 = tpu.assume_multiple %83, 8 : i32
    %85 = arith.addi %2, %84 : i32
    %86 = tpu.assume_multiple %85, 8 : i32
    %87 = arith.index_cast %86 : i32 to index
    %c0_40 = arith.constant 0 : index
    %88 = vector.load %arg1[%87, %c0_40] : memref<64x1xf32, #tpu.memory_space<vmem>>, vector<8x1xf32>
    %c0_41 = arith.constant 0 : index
    %c0_42 = arith.constant 0 : index
    %89 = vector.load %arg2[%c0_41, %c0_42] : memref<1x32xf32, #tpu.memory_space<vmem>>, vector<1x32xf32>
    %90 = vector.broadcast %88 : vector<8x1xf32> to vector<8x32xf32>
    %91 = vector.broadcast %89 : vector<1x32xf32> to vector<8x32xf32>
    %92 = arith.mulf %90, %91 : vector<8x32xf32>
    %c0_43 = arith.constant 0 : index
    %c0_44 = arith.constant 0 : index
    %93 = vector.load %arg3[%c0_43, %c0_44] : memref<1x32xf32, #tpu.memory_space<vmem>>, vector<1x32xf32>
    %94 = vector.broadcast %93 : vector<1x32xf32> to vector<8x32xf32>
    %95 = arith.addf %92, %94 : vector<8x32xf32>
    %96 = arith.truncf %80 : vector<8x32xf32> to vector<8x32xbf16>
    %c0_45 = arith.constant 0 : index
    %c0_46 = arith.constant 0 : index
    %97 = vector.load %arg4[%c0_45, %c0_46] : memref<32x32xbf16, #tpu.memory_space<vmem>>, vector<32x32xbf16>
    %cst_47 = arith.constant dense<0.000000e+00> : vector<8x32xf32>
    %98 = tpu.matmul %96, %97, %cst_47 {dimension_numbers = #tpu.dot_dimension_numbers<[1], [0], [0], [1], [0, 0, 1, 1], [], []>} : vector<8x32xbf16>, vector<32x32xbf16>, vector<8x32xf32> -> vector<8x32xf32>
    %99 = arith.addf %95, %98 : vector<8x32xf32>
    %100 = math.tanh %99 : vector<8x32xf32>
    %101 = arith.index_cast %84 : i32 to index
    %c0_48 = arith.constant 0 : index
    %102 = vector.load %arg8[%101, %c0_48] : memref<64x32xf32, #tpu.memory_space<vmem>>, vector<8x32xf32>
    tpu.vector_store %arg8[%101, %c0_48], %100 {strides = array<i32>} : memref<64x32xf32, #tpu.memory_space<vmem>>, vector<8x32xf32>,
    %c5_i32 = arith.constant 5 : i32
    %c8_i32_49 = arith.constant 8 : i32
    %103 = arith.muli %c5_i32, %c8_i32_49 : i32
    %104 = tpu.assume_multiple %103, 8 : i32
    %105 = arith.addi %2, %104 : i32
    %106 = tpu.assume_multiple %105, 8 : i32
    %107 = arith.index_cast %106 : i32 to index
    %c0_50 = arith.constant 0 : index
    %108 = vector.load %arg1[%107, %c0_50] : memref<64x1xf32, #tpu.memory_space<vmem>>, vector<8x1xf32>
    %c0_51 = arith.constant 0 : index
    %c0_52 = arith.constant 0 : index
    %109 = vector.load %arg2[%c0_51, %c0_52] : memref<1x32xf32, #tpu.memory_space<vmem>>, vector<1x32xf32>
    %110 = vector.broadcast %108 : vector<8x1xf32> to vector<8x32xf32>
    %111 = vector.broadcast %109 : vector<1x32xf32> to vector<8x32xf32>
    %112 = arith.mulf %110, %111 : vector<8x32xf32>
    %c0_53 = arith.constant 0 : index
    %c0_54 = arith.constant 0 : index
    %113 = vector.load %arg3[%c0_53, %c0_54] : memref<1x32xf32, #tpu.memory_space<vmem>>, vector<1x32xf32>
    %114 = vector.broadcast %113 : vector<1x32xf32> to vector<8x32xf32>
    %115 = arith.addf %112, %114 : vector<8x32xf32>
    %116 = arith.truncf %100 : vector<8x32xf32> to vector<8x32xbf16>
    %c0_55 = arith.constant 0 : index
    %c0_56 = arith.constant 0 : index
    %117 = vector.load %arg4[%c0_55, %c0_56] : memref<32x32xbf16, #tpu.memory_space<vmem>>, vector<32x32xbf16>
    %cst_57 = arith.constant dense<0.000000e+00> : vector<8x32xf32>
    %118 = tpu.matmul %116, %117, %cst_57 {dimension_numbers = #tpu.dot_dimension_numbers<[1], [0], [0], [1], [0, 0, 1, 1], [], []>} : vector<8x32xbf16>, vector<32x32xbf16>, vector<8x32xf32> -> vector<8x32xf32>
    %119 = arith.addf %115, %118 : vector<8x32xf32>
    %120 = math.tanh %119 : vector<8x32xf32>
    %121 = arith.index_cast %104 : i32 to index
    %c0_58 = arith.constant 0 : index
    %122 = vector.load %arg8[%121, %c0_58] : memref<64x32xf32, #tpu.memory_space<vmem>>, vector<8x32xf32>
    tpu.vector_store %arg8[%121, %c0_58], %120 {strides = array<i32>} : memref<64x32xf32, #tpu.memory_space<vmem>>, vector<8x32xf32>,
    %c6_i32 = arith.constant 6 : i32
    %c8_i32_59 = arith.constant 8 : i32
    %123 = arith.muli %c6_i32, %c8_i32_59 : i32
    %124 = tpu.assume_multiple %123, 8 : i32
    %125 = arith.addi %2, %124 : i32
    %126 = tpu.assume_multiple %125, 8 : i32
    %127 = arith.index_cast %126 : i32 to index
    %c0_60 = arith.constant 0 : index
    %128 = vector.load %arg1[%127, %c0_60] : memref<64x1xf32, #tpu.memory_space<vmem>>, vector<8x1xf32>
    %c0_61 = arith.constant 0 : index
    %c0_62 = arith.constant 0 : index
    %129 = vector.load %arg2[%c0_61, %c0_62] : memref<1x32xf32, #tpu.memory_space<vmem>>, vector<1x32xf32>
    %130 = vector.broadcast %128 : vector<8x1xf32> to vector<8x32xf32>
    %131 = vector.broadcast %129 : vector<1x32xf32> to vector<8x32xf32>
    %132 = arith.mulf %130, %131 : vector<8x32xf32>
    %c0_63 = arith.constant 0 : index
    %c0_64 = arith.constant 0 : index
    %133 = vector.load %arg3[%c0_63, %c0_64] : memref<1x32xf32, #tpu.memory_space<vmem>>, vector<1x32xf32>
    %134 = vector.broadcast %133 : vector<1x32xf32> to vector<8x32xf32>
    %135 = arith.addf %132, %134 : vector<8x32xf32>
    %136 = arith.truncf %120 : vector<8x32xf32> to vector<8x32xbf16>
    %c0_65 = arith.constant 0 : index
    %c0_66 = arith.constant 0 : index
    %137 = vector.load %arg4[%c0_65, %c0_66] : memref<32x32xbf16, #tpu.memory_space<vmem>>, vector<32x32xbf16>
    %cst_67 = arith.constant dense<0.000000e+00> : vector<8x32xf32>
    %138 = tpu.matmul %136, %137, %cst_67 {dimension_numbers = #tpu.dot_dimension_numbers<[1], [0], [0], [1], [0, 0, 1, 1], [], []>} : vector<8x32xbf16>, vector<32x32xbf16>, vector<8x32xf32> -> vector<8x32xf32>
    %139 = arith.addf %135, %138 : vector<8x32xf32>
    %140 = math.tanh %139 : vector<8x32xf32>
    %141 = arith.index_cast %124 : i32 to index
    %c0_68 = arith.constant 0 : index
    %142 = vector.load %arg8[%141, %c0_68] : memref<64x32xf32, #tpu.memory_space<vmem>>, vector<8x32xf32>
    tpu.vector_store %arg8[%141, %c0_68], %140 {strides = array<i32>} : memref<64x32xf32, #tpu.memory_space<vmem>>, vector<8x32xf32>,
    %c7_i32 = arith.constant 7 : i32
    %c8_i32_69 = arith.constant 8 : i32
    %143 = arith.muli %c7_i32, %c8_i32_69 : i32
    %144 = tpu.assume_multiple %143, 8 : i32
    %145 = arith.addi %2, %144 : i32
    %146 = tpu.assume_multiple %145, 8 : i32
    %147 = arith.index_cast %146 : i32 to index
    %c0_70 = arith.constant 0 : index
    %148 = vector.load %arg1[%147, %c0_70] : memref<64x1xf32, #tpu.memory_space<vmem>>, vector<8x1xf32>
    %c0_71 = arith.constant 0 : index
    %c0_72 = arith.constant 0 : index
    %149 = vector.load %arg2[%c0_71, %c0_72] : memref<1x32xf32, #tpu.memory_space<vmem>>, vector<1x32xf32>
    %150 = vector.broadcast %148 : vector<8x1xf32> to vector<8x32xf32>
    %151 = vector.broadcast %149 : vector<1x32xf32> to vector<8x32xf32>
    %152 = arith.mulf %150, %151 : vector<8x32xf32>
    %c0_73 = arith.constant 0 : index
    %c0_74 = arith.constant 0 : index
    %153 = vector.load %arg3[%c0_73, %c0_74] : memref<1x32xf32, #tpu.memory_space<vmem>>, vector<1x32xf32>
    %154 = vector.broadcast %153 : vector<1x32xf32> to vector<8x32xf32>
    %155 = arith.addf %152, %154 : vector<8x32xf32>
    %156 = arith.truncf %140 : vector<8x32xf32> to vector<8x32xbf16>
    %c0_75 = arith.constant 0 : index
    %c0_76 = arith.constant 0 : index
    %157 = vector.load %arg4[%c0_75, %c0_76] : memref<32x32xbf16, #tpu.memory_space<vmem>>, vector<32x32xbf16>
    %cst_77 = arith.constant dense<0.000000e+00> : vector<8x32xf32>
    %158 = tpu.matmul %156, %157, %cst_77 {dimension_numbers = #tpu.dot_dimension_numbers<[1], [0], [0], [1], [0, 0, 1, 1], [], []>} : vector<8x32xbf16>, vector<32x32xbf16>, vector<8x32xf32> -> vector<8x32xf32>
    %159 = arith.addf %155, %158 : vector<8x32xf32>
    %160 = math.tanh %159 : vector<8x32xf32>
    %161 = arith.index_cast %144 : i32 to index
    %c0_78 = arith.constant 0 : index
    %162 = vector.load %arg8[%161, %c0_78] : memref<64x32xf32, #tpu.memory_space<vmem>>, vector<8x32xf32>
    tpu.vector_store %arg8[%161, %c0_78], %160 {strides = array<i32>} : memref<64x32xf32, #tpu.memory_space<vmem>>, vector<8x32xf32>,
    %c8_i32_79 = arith.constant 8 : i32
    %c0_80 = arith.constant 0 : index
    %c0_81 = arith.constant 0 : index
    %163 = vector.load %arg8[%c0_80, %c0_81] : memref<64x32xf32, #tpu.memory_space<vmem>>, vector<64x32xf32>
    %c0_82 = arith.constant 0 : index
    %c0_83 = arith.constant 0 : index
    %164 = vector.load %arg5[%c0_82, %c0_83] : memref<32x2xf32, #tpu.memory_space<vmem>>, vector<32x2xf32>
    %cst_84 = arith.constant dense<0.000000e+00> : vector<64x2xf32>
    %165 = tpu.matmul %163, %164, %cst_84 {dimension_numbers = #tpu.dot_dimension_numbers<[1], [0], [0], [1], [0, 0, 1, 1], [], []>} : vector<64x32xf32>, vector<32x2xf32>, vector<64x2xf32> -> vector<64x2xf32>
    %c0_85 = arith.constant 0 : index
    %c0_86 = arith.constant 0 : index
    %166 = vector.load %arg6[%c0_85, %c0_86] : memref<1x2xf32, #tpu.memory_space<vmem>>, vector<1x2xf32>
    %167 = vector.broadcast %166 : vector<1x2xf32> to vector<64x2xf32>
    %168 = arith.addf %165, %167 : vector<64x2xf32>
    %169 = arith.index_cast %2 : i32 to index
    %c0_87 = arith.constant 0 : index
    %170 = vector.load %arg7[%169, %c0_87] : memref<64x2xf32, #tpu.memory_space<vmem>>, vector<64x2xf32>
    tpu.vector_store %arg7[%169, %c0_87], %168 {strides = array<i32>} : memref<64x2xf32, #tpu.memory_space<vmem>>, vector<64x2xf32>,
    %c1_i32_88 = arith.constant 1 : i32
    return
  }
  func.func @transform_0(%arg0: i32) -> (i32, i32) {
    %c0_i32 = arith.constant 0 : i32
    %c0_i32_0 = arith.constant 0 : i32
    return %arg0, %c0_i32 : i32, i32
  }
  func.func @transform_1(%arg0: i32) -> (i32, i32) {
    %c0_i32 = arith.constant 0 : i32
    %c0_i32_0 = arith.constant 0 : i32
    %c0_i32_1 = arith.constant 0 : i32
    return %c0_i32, %c0_i32_0 : i32, i32
  }
  func.func @transform_2(%arg0: i32) -> (i32, i32) {
    %c0_i32 = arith.constant 0 : i32
    %c0_i32_0 = arith.constant 0 : i32
    %c0_i32_1 = arith.constant 0 : i32
    return %c0_i32, %c0_i32_0 : i32, i32
  }
  func.func @transform_3(%arg0: i32) -> (i32, i32) {
    %c0_i32 = arith.constant 0 : i32
    %c0_i32_0 = arith.constant 0 : i32
    %c0_i32_1 = arith.constant 0 : i32
    return %c0_i32, %c0_i32_0 : i32, i32
  }
  func.func @transform_4(%arg0: i32) -> (i32, i32) {
    %c0_i32 = arith.constant 0 : i32
    %c0_i32_0 = arith.constant 0 : i32
    %c0_i32_1 = arith.constant 0 : i32
    return %c0_i32, %c0_i32_0 : i32, i32
  }
  func.func @transform_5(%arg0: i32) -> (i32, i32) {
    %c0_i32 = arith.constant 0 : i32
    %c0_i32_0 = arith.constant 0 : i32
    %c0_i32_1 = arith.constant 0 : i32
    return %c0_i32, %c0_i32_0 : i32, i32
  }
  func.func @transform_6(%arg0: i32) -> (i32, i32) {
    %c0_i32 = arith.constant 0 : i32
    %c0_i32_0 = arith.constant 0 : i32
    return %arg0, %c0_i32 : i32, i32
  }
}

</mosaic_0001>

<bundles_post_ra>
// kernel: gaussian_rnn_forward.1
= control target key start
LH: loop header
LB: loop body
LE: loop exit
PB: predicated region body
PF: predicated region fallthrough
CT: control target
= control target key end

     0   :  { %v1115_v0 = vmov 0.0   ;;  %vm1116_vm0 = vmmov 0   ;;  %v1117_v2 = vmov 0   ;;  %vm64_vm1 = vcmask 261120   ;;  %s1353_s3 = inlined_call_operand.vmem [shape: bf16[32,32], index: 3, kind: input, shape index: {}]   ;;  %s1354_s0 = inlined_call_operand.vmem [shape: f32[64,1], index: 0, kind: input, shape index: {}]   ;;  %s1355_s1 = inlined_call_operand.vmem [shape: f32[1,32], index: 1, kind: input, shape index: {}]   ;;  %s1356_s2 = inlined_call_operand.vmem [shape: f32[1,32], index: 2, kind: input, shape index: {}]   ;;  %s1357_s4 = inlined_call_operand.vmem [shape: f32[32,2], index: 4, kind: input, shape index: {}]   ;;  %s1358_s5 = inlined_call_operand.vmem [shape: f32[1,2], index: 5, kind: input, shape index: {}]   ;;  %s1359_s6 = inlined_call_operand.vmem [shape: f32[64,2], index: 6, kind: output, shape index: {}]  }
   0x1   :  { %986 = vmatprep.subr.bf16.mxu1 %v1115_v0  ;;  %v1083_v1 = vld [vmem:[%s1353_s3] sm:$0xff]   ;;  %990 = vmatprep.mubr.msk.bf16.mxu1 %vm1116_vm0, %v1115_v0  ;;  %v1084_v3 = vld [vmem:[%s1353_s3 + $0x8] sm:$0xff]   ;;  %v929_v7 = vld [vmem:[%s1354_s0 + $0x30] sm:$0xff]  ;;  %vm875_vm2 = vcmask 15360  }
   0x2   :  { %1081 = vset.pattern.permute.xlu0 %v1117_v2  ;;  %1002 = vmatprep.subr.bf16.mxu0 %v1115_v0  ;;  %v26_v4 = vld [vmem:[%s1354_s0] sm:$0xff]  ;;  %v899_v5 = vld [vmem:[%s1354_s0 + $0x8] sm:$0xff]  ;;  %v905_v24 = vld [vmem:[%s1354_s0 + $0x10] sm:$0xff] }
   0x3   :  { %987 = vmatpush3.bf16.msra.mxu1 %v1083_v1  ;;  %1006 = vmatprep.mubr.msk.bf16.mxu0 %vm1116_vm0, %v1115_v0  ;;  %v917_v6 = vld [vmem:[%s1354_s0 + $0x20] sm:$0xff]  ;;  %v1086_v9 = vld [vmem:[%s1353_s3 + $0x8] sm:$0xff]   ;;  %v911_v25 = vld [vmem:[%s1354_s0 + $0x18] sm:$0xff] }
   0x4   :  { %988 = vmatprep.subr.bf16.mxu1 %v1115_v0  ;;  %30 = vperm.xlu0 %1081, %v26_v4   ;;  %v1085_v8 = vld [vmem:[%s1353_s3] sm:$0xff]   ;;  %v1088_v23 = vld [vmem:[%s1353_s3 + $0x8] sm:$0xff]   ;;  %v935_v27 = vld [vmem:[%s1354_s0 + $0x38] sm:$0xff] }
   0x5   :  { %1082 = vset.pattern.permute.xlu1 %v1117_v2  ;;  %v1192_v10 = vld [vmem:[%s1355_s1] ss:$0 sm:$0xff]  ;;  %v923_v26 = vld [vmem:[%s1354_s0 + $0x28] sm:$0xff] }
   0x6   :  { %v1198_v13 = vld [vmem:[%s1356_s2] ss:$0 sm:$0xff]  ;;  %205 = vperm.xlu1 %1082, %v905_v24   ;;  %v1090_v39 = vld [vmem:[%s1353_s3 + $0x8] sm:$0xff]  }
   0x7   :  { %989 = vmatpush3.bf16.msra.mxu1 %v1084_v3  ;;  %v1087_v22 = vld [vmem:[%s1353_s3] sm:$0xff]   ;;  %v1092_v51 = vld [vmem:[%s1353_s3 + $0x8] sm:$0xff]  }
   0x8   :  { %117 = vperm.xlu0 %1081, %v899_v5   ;;  %994 = vmatprep.subr.bf16.mxu1 %v1115_v0  ;;  %v1089_v38 = vld [vmem:[%s1353_s3] sm:$0xff]   ;;  %v1094_v63 = vld [vmem:[%s1353_s3 + $0x8] sm:$0xff]  }
   0x9   :  { %1003 = vmatpush3.bf16.msra.mxu0 %v1087_v22  ;;  %v1091_v50 = vld [vmem:[%s1353_s3] sm:$0xff]  }
   0xa   :  { %991 = vmatmul.mubr.bf16.vlgmr.msra.gmra.mrb[0].mxu1 %v1117_v2  ;;  %1004 = vmatprep.subr.bf16.mxu0 %v1115_v0  ;;  %v1093_v62 = vld [vmem:[%s1353_s3] sm:$0xff]  }
   0xb   :  { %998 = vmatprep.mubr.msk.bf16.mxu1 %vm1116_vm0, %v1115_v0  ;;  %995 = vmatpush3.bf16.msra.mxu1 %v1085_v8 }
   0xc   :  { %381 = vperm.xlu0 %1081, %v917_v6   ;;  %996 = vmatprep.subr.bf16.mxu1 %v1115_v0 }
   0xd   :  { %1005 = vmatpush3.bf16.msra.mxu0 %v1088_v23  ;;  %293 = vperm.xlu1 %1082, %v911_v25  }
   0xe   :  { %1018 = vmatprep.subr.bf16.mxu0 %v1115_v0 }
   0xf   :  { %997 = vmatpush3.bf16.msra.mxu1 %v1086_v9 }
  0x10   :  { %557 = vperm.xlu0 %1081, %v929_v7   ;;  %1010 = vmatprep.subr.bf16.mxu1 %v1115_v0 }
  0x11   :  { %469 = vperm.xlu1 %1082, %v923_v26   ;;  %v737_v26 = vld [vmem:[%s1357_s4 + $0x10] sm:$0xff] }
  0x15   :  { %645 = vperm.xlu1 %1082, %v935_v27   ;;  %v738_v27 = vld [vmem:[%s1357_s4 + $0x18] sm:$0xff] }
  0x83   :  { %v31_v11 = vpop.permute.xlu0 %30 }
  0x84   :  { %v39_v12 = vmul.f32 %v1192_v10, %v31_v11 }
  0x85   :  { %v206_v40 = vpop.permute.xlu1 %205 }
  0x86   :  { %v47_v14 = vadd.f32 %v1198_v13, %v39_v12  ;;  %v214_v41 = vmul.f32 %v1192_v10, %v206_v40  ;;  %v1095_v12 = vld [vmem:[%s1353_s3] sm:$0xff]  }
  0x87   :  { %v118_v28 = vpop.permute.xlu0 %117 }
  0x88   :  { %v126_v29 = vmul.f32 %v1192_v10, %v118_v28  ;;  %v222_v42 = vadd.f32 %v1198_v13, %v214_v41 }
  0x8a   :  { %v134_v30 = vadd.f32 %v1198_v13, %v126_v29 }
  0x8b   :  { %v382_v1 = vpop.permute.xlu0 %381 }
  0x8c   :  { %v294_v52 = vpop.permute.xlu1 %293  ;;  %v390_v2 = vmul.f32 %v1192_v10, %v382_v1 }
  0x8d   :  { %v302_v53 = vmul.f32 %v1192_v10, %v294_v52 }
  0x8e   :  { %v398_v3 = vadd.f32 %v1198_v13, %v390_v2 }
  0x8f   :  { %v310_v54 = vadd.f32 %v1198_v13, %v302_v53 }
  0xdd   :  { %v102_v15 = vpop.f32.mrb[0].mxu1 }
  0xde   :  { %v108_v16 = vadd.f32 %v102_v15, %v47_v14  ;;  %v992_v17 = vpop.f32.mrb[1].mxu1  ;;  %v1096_v14 = vld [vmem:[%s1353_s3 + $0x8] sm:$0xff]   ;;  %v735_v15 = vld [vmem:[%s1357_s4] sm:$0xff] }
  0xdf   :  { %v105_v18 = vpop.f32.mrb[2].mxu1 }
  0xe0   :  { %1099 = vtanh.f32 %v108_v16  ;;  %v993_v19 = vpop.f32.mrb[3].mxu1  ;;  %v736_v16 = vld [vmem:[%s1357_s4 + $0x8] sm:$0xff]  ;;  %v470_v18 = vpop.permute.xlu1 %469 }
  0xe1   :  { %v1070_v17 = vpack.c.bf16 %v736_v16, %v735_v15  ;;  %v478_v19 = vmul.f32 %v1192_v10, %v470_v18 }
  0xea   :  { %v1100_v20 = vpop.eup %1099 }
  0xeb   :  { %110 = vst.msk [vmem:[#allocation2] sm:$0xff] %vm64_vm1, %v1100_v20  ;;  %v135_v21 = vpack.c.bf16 %v1100_v20, %v1100_v20  ;;  %v486_v20 = vadd.f32 %v1198_v13, %v478_v19 }
  0xed   :  { %999 = vmatmul.mubr.msk.bf16.vlgmr.msra.gmra.mrb[4].mxu1 %vm64_vm1, %v135_v21 }
  0xee   :  { %1014 = vmatprep.mubr.msk.bf16.mxu1 %vm1116_vm0, %v1115_v0  ;;  %1011 = vmatpush3.bf16.msra.mxu1 %v1089_v38  ;;  %v1098_v38 = vld [vmem:[%s1353_s3 + $0x8] sm:$0xff]  }
  0xef   :  { %1012 = vmatprep.subr.bf16.mxu1 %v1115_v0 }
  0xf2   :  { %1013 = vmatpush3.bf16.msra.mxu1 %v1090_v39  ;;  %v558_v39 = vpop.permute.xlu0 %557 }
  0xf3   :  { %1026 = vmatprep.subr.bf16.mxu1 %v1115_v0  ;;  %v566_v40 = vmul.f32 %v1192_v10, %v558_v39 }
  0xf5   :  { %v574_v41 = vadd.f32 %v1198_v13, %v566_v40 }
 0x1c0   :  { %v189_v31 = vpop.f32.mrb[4].mxu1 }
 0x1c1   :  { %v195_v32 = vadd.f32 %v189_v31, %v134_v30  ;;  %v1000_v33 = vpop.f32.mrb[5].mxu1  ;;  %v1074_v30 = vpack.c.bf16 %v738_v27, %v737_v26  ;;  %v727_v31 = vld [vmem:[#allocation2] sm:$0xff] }
 0x1c2   :  { %v192_v34 = vpop.f32.mrb[6].mxu1 }
 0x1c3   :  { %1101 = vtanh.f32 %v195_v32  ;;  %v1001_v35 = vpop.f32.mrb[7].mxu1 }
 0x1cd   :  { %v1102_v36 = vpop.eup %1101 }
 0x1ce   :  { %198 = vst.msk [vmem:[#allocation2 + $0x8] sm:$0xff] %vm64_vm1, %v1102_v36  ;;  %v223_v37 = vpack.c.bf16 %v1102_v36, %v1102_v36 }
 0x1d0   :  { %1007 = vmatmul.mubr.msk.bf16.vlgmr.msra.gmra.mrb[0].mxu0 %vm64_vm1, %v223_v37  ;;  %v1097_v37 = vld [vmem:[%s1353_s3] sm:$0xff]  }
 0x1d1   :  { %1022 = vmatprep.mubr.msk.bf16.mxu0 %vm1116_vm0, %v1115_v0  ;;  %1019 = vmatpush3.bf16.msra.mxu0 %v1091_v50 }
 0x1d2   :  { %1020 = vmatprep.subr.bf16.mxu0 %v1115_v0 }
 0x1d5   :  { %1021 = vmatpush3.bf16.msra.mxu0 %v1092_v51  ;;  %v728_v32 = vld [vmem:[#allocation2 + $0x8] sm:$0xff] }
 0x1d6   :  { %1034 = vmatprep.subr.bf16.mxu0 %v1115_v0 }
 0x2a3   :  { %v277_v43 = vpop.f32.mrb[0].mxu0 }
 0x2a4   :  { %v283_v44 = vadd.f32 %v277_v43, %v222_v42  ;;  %v1008_v45 = vpop.f32.mrb[1].mxu0 }
 0x2a5   :  { %v280_v46 = vpop.f32.mrb[2].mxu0 }
 0x2a6   :  { %1103 = vtanh.f32 %v283_v44  ;;  %v1009_v47 = vpop.f32.mrb[3].mxu0 }
 0x2b0   :  { %v1104_v48 = vpop.eup %1103 }
 0x2b1   :  { %286 = vst.msk [vmem:[#allocation2 + $0x10] sm:$0xff] %vm64_vm1, %v1104_v48  ;;  %v311_v49 = vpack.c.bf16 %v1104_v48, %v1104_v48 }
 0x2b3   :  { %1015 = vmatmul.mubr.msk.bf16.vlgmr.msra.gmra.mrb[8].mxu1 %vm64_vm1, %v311_v49 }
 0x2b4   :  { %1030 = vmatprep.mubr.msk.bf16.mxu1 %vm1116_vm0, %v1115_v0  ;;  %1027 = vmatpush3.bf16.msra.mxu1 %v1093_v62  ;;  %v646_v62 = vpop.permute.xlu1 %645 }
 0x2b5   :  { %1028 = vmatprep.subr.bf16.mxu1 %v1115_v0 }
 0x2b8   :  { %1029 = vmatpush3.bf16.msra.mxu1 %v1094_v63  ;;  %v729_v33 = vld [vmem:[#allocation2 + $0x10] sm:$0xff]  ;;  %v654_v63 = vmul.f32 %v1192_v10, %v646_v62 }
 0x2b9   :  { %1042 = vmatprep.subr.bf16.mxu1 %v1115_v0 }
 0x2ba   :  { %v662_v1 = vadd.f32 %v1198_v13, %v654_v63 }
 0x386   :  { %v365_v55 = vpop.f32.mrb[8].mxu1 }
 0x387   :  { %v371_v56 = vadd.f32 %v365_v55, %v310_v54  ;;  %v1016_v57 = vpop.f32.mrb[9].mxu1 }
 0x388   :  { %v368_v58 = vpop.f32.mrb[10].mxu1 }
 0x389   :  { %1105 = vtanh.f32 %v371_v56  ;;  %v1017_v59 = vpop.f32.mrb[11].mxu1 }
 0x393   :  { %v1106_v60 = vpop.eup %1105 }
 0x394   :  { %374 = vst.msk [vmem:[#allocation2 + $0x18] sm:$0xff] %vm64_vm1, %v1106_v60  ;;  %v399_v61 = vpack.c.bf16 %v1106_v60, %v1106_v60 }
 0x396   :  { %1023 = vmatmul.mubr.msk.bf16.vlgmr.msra.gmra.mrb[4].mxu0 %vm64_vm1, %v399_v61 }
 0x397   :  { %1038 = vmatprep.mubr.msk.bf16.mxu0 %vm1116_vm0, %v1115_v0  ;;  %1035 = vmatpush3.bf16.msra.mxu0 %v1095_v12 }
 0x398   :  { %1036 = vmatprep.subr.bf16.mxu0 %v1115_v0 }
 0x39b   :  { %1037 = vmatpush3.bf16.msra.mxu0 %v1096_v14  ;;  %v730_v34 = vld [vmem:[#allocation2 + $0x18] sm:$0xff] }
 0x39c   :  { %1071 = vmatprep.subr.bf16.mxu0 %v1070_v17 }
 0x469   :  { %v453_v4 = vpop.f32.mrb[4].mxu0 }
 0x46a   :  { %v459_v5 = vadd.f32 %v453_v4, %v398_v3  ;;  %v1024_v6 = vpop.f32.mrb[5].mxu0 }
 0x46b   :  { %v456_v7 = vpop.f32.mrb[6].mxu0 }
 0x46c   :  { %1107 = vtanh.f32 %v459_v5  ;;  %v1025_v8 = vpop.f32.mrb[7].mxu0 }
 0x476   :  { %v1108_v9 = vpop.eup %1107 }
 0x477   :  { %462 = vst.msk [vmem:[#allocation2 + $0x20] sm:$0xff] %vm64_vm1, %v1108_v9  ;;  %v487_v11 = vpack.c.bf16 %v1108_v9, %v1108_v9 }
 0x479   :  { %1031 = vmatmul.mubr.msk.bf16.vlgmr.msra.gmra.mrb[12].mxu1 %vm64_vm1, %v487_v11 }
 0x47a   :  { %1046 = vmatprep.mubr.msk.bf16.mxu1 %vm1116_vm0, %v1115_v0  ;;  %1043 = vmatpush3.bf16.msra.mxu1 %v1097_v37 }
 0x47b   :  { %1044 = vmatprep.subr.bf16.mxu1 %v1115_v0  ;;  %v941_v0 = vld [vmem:[%s1358_s5] ss:$0 sm:$0xff] }
 0x47e   :  { %v731_v35 = vld [vmem:[#allocation2 + $0x20] sm:$0xff]  ;;  %1045 = vmatpush3.bf16.msra.mxu1 %v1098_v38 }
 0x54c   :  { %v541_v21 = vpop.f32.mrb[12].mxu1 }
 0x54d   :  { %v547_v22 = vadd.f32 %v541_v21, %v486_v20  ;;  %v1032_v23 = vpop.f32.mrb[13].mxu1 }
 0x54e   :  { %v544_v24 = vpop.f32.mrb[14].mxu1 }
 0x54f   :  { %1109 = vtanh.f32 %v547_v22  ;;  %v1033_v25 = vpop.f32.mrb[15].mxu1 }
 0x559   :  { %v1110_v28 = vpop.eup %1109 }
 0x55a   :  { %550 = vst.msk [vmem:[#allocation2 + $0x28] sm:$0xff] %vm64_vm1, %v1110_v28  ;;  %v575_v29 = vpack.c.bf16 %v1110_v28, %v1110_v28 }
 0x55c   :  { %1039 = vmatmul.mubr.msk.bf16.vlgmr.msra.gmra.mrb[8].mxu0 %vm64_vm1, %v575_v29 }
 0x55d   :  { %1073 = vmatpush3.bf16.msra.mxu0 %v1070_v17  ;;  %1058 = vmatprep.mubr.msk.f32.mxu0 %vm64_vm1, %v727_v31 }
 0x55e   :  { %1075 = vmatprep.subr.bf16.mxu0 %v1074_v30 }
 0x561   :  { %1077 = vmatpush3.bf16.msra.mxu0 %v1074_v30  ;;  %v732_v36 = vld [vmem:[#allocation2 + $0x28] sm:$0xff] }
 0x564   :  { %1059 = vmatmul.mubr.msk.f32.vlgmr.msra.gmra.mrb[12].mxu0 %vm64_vm1, %v728_v32 }
 0x565   :  { %1061 = vmatprep.mubr.msk.f32.mxu0 %vm64_vm1, %v729_v33 }
 0x568   :  { %1062 = vmatmul.mubr.msk.f32.gmra.mrb[14].mxu0 %vm64_vm1, %v730_v34 }
 0x569   :  { %1064 = vmatprep.mubr.msk.f32.mxu0 %vm64_vm1, %v731_v35 }
 0x56c   :  { %1065 = vmatmul.mubr.msk.f32.gmra.mrb[16].mxu0 %vm64_vm1, %v732_v36 }
 0x62f   :  { %v629_v42 = vpop.f32.mrb[8].mxu0 }
 0x630   :  { %v635_v43 = vadd.f32 %v629_v42, %v574_v41  ;;  %v1040_v44 = vpop.f32.mrb[9].mxu0 }
 0x631   :  { %v632_v45 = vpop.f32.mrb[10].mxu0 }
 0x632   :  { %1111 = vtanh.f32 %v635_v43  ;;  %v1041_v46 = vpop.f32.mrb[11].mxu0 }
 0x637   :  { %v1060_v47 = vpop.f32.mrb[12].mxu0 }
 0x638   :  { %v842_v48 = vadd.f32 %v1060_v47, %v941_v0  ;;  %v836_v49 = vpop.f32.mrb[13].mxu0 }
 0x639   :  { %v837_v50 = vadd.f32 %v941_v0, %v836_v49 }
 0x63a   :  { %877 = vst.msk [vmem:[%s1359_s6 + $0x8] sm:$0xff] %vm875_vm2, %v842_v48 }
 0x63b   :  { %876 = vst.msk [vmem:[%s1359_s6] sm:$0xff] %vm875_vm2, %v837_v50  ;;  %v1063_v51 = vpop.f32.mrb[14].mxu0 }
 0x63c   :  { %v1112_v52 = vpop.eup %1111  ;;  %v852_v53 = vadd.f32 %v1063_v51, %v941_v0  ;;  %v846_v54 = vpop.f32.mrb[15].mxu0 }
 0x63d   :  { %638 = vst.msk [vmem:[#allocation2 + $0x30] sm:$0xff] %vm64_vm1, %v1112_v52  ;;  %v847_v55 = vadd.f32 %v941_v0, %v846_v54  ;;  %v663_v56 = vpack.c.bf16 %v1112_v52, %v1112_v52 }
 0x63e   :  { %879 = vst.msk [vmem:[%s1359_s6 + $0x18] sm:$0xff] %vm875_vm2, %v852_v53 }
 0x63f   :  { %878 = vst.msk [vmem:[%s1359_s6 + $0x10] sm:$0xff] %vm875_vm2, %v847_v55  ;;  %1047 = vmatmul.mubr.msk.bf16.vlgmr.msra.gmra.mrb[16].mxu1 %vm64_vm1, %v663_v56  ;;  %v1066_v57 = vpop.f32.mrb[16].mxu0 }
 0x640   :  { %v862_v58 = vadd.f32 %v1066_v57, %v941_v0  ;;  %v856_v59 = vpop.f32.mrb[17].mxu0 }
 0x641   :  { %v857_v60 = vadd.f32 %v941_v0, %v856_v59 }
 0x642   :  { %881 = vst.msk [vmem:[%s1359_s6 + $0x28] sm:$0xff] %vm875_vm2, %v862_v58 }
 0x643   :  { %880 = vst.msk [vmem:[%s1359_s6 + $0x20] sm:$0xff] %vm875_vm2, %v857_v60 }
 0x644   :  { %v733_v61 = vld [vmem:[#allocation2 + $0x30] sm:$0xff] }
 0x645   :  { %1067 = vmatprep.mubr.msk.f32.mxu0 %vm64_vm1, %v733_v61 }
 0x712   :  { %v717_v2 = vpop.f32.mrb[16].mxu1 }
 0x713   :  { %v723_v3 = vadd.f32 %v717_v2, %v662_v1  ;;  %v1048_v4 = vpop.f32.mrb[17].mxu1 }
 0x714   :  { %v720_v5 = vpop.f32.mrb[18].mxu1 }
 0x715   :  { %1113 = vtanh.f32 %v723_v3  ;;  %v1049_v6 = vpop.f32.mrb[19].mxu1 }
 0x71f   :  { %v1114_v7 = vpop.eup %1113 }
 0x720   :  { %726 = vst.msk [vmem:[#allocation2 + $0x38] sm:$0xff] %vm64_vm1, %v1114_v7 }
 0x727   :  { %v734_v8 = vld [vmem:[#allocation2 + $0x38] sm:$0xff] }
 0x728   :  { %1068 = vmatmul.mubr.msk.f32.gmra.mrb[18].mxu0 %vm64_vm1, %v734_v8 }
 0x7fb   :  { %v1069_v9 = vpop.f32.mrb[18].mxu0 }
 0x7fc   :  { %v872_v11 = vadd.f32 %v1069_v9, %v941_v0  ;;  %v866_v12 = vpop.f32.mrb[19].mxu0 }
 0x7fd   :  { %v867_v14 = vadd.f32 %v941_v0, %v866_v12 }
 0x7fe   :  { %883 = vst.msk [vmem:[%s1359_s6 + $0x38] sm:$0xff] %vm875_vm2, %v872_v11 }
 0x7ff   :  { %882 = vst.msk [vmem:[%s1359_s6 + $0x30] sm:$0xff] %vm875_vm2, %v867_v14 }

</bundles_post_ra>
